<compile_context>
chip_gen: v6e
topology: v6e:2x2x1
jax: 0.10.0
libtpu: 0.0.40
codegen_flags: <defaults>
</compile_context>

<pallas_src>
import functools

import jax
import jax.numpy as jnp
from jax.experimental import pallas as pl
from jax.experimental.pallas import tpu as pltpu


def _mlp_softmax_kernel(x_ref, w1_ref, b1_ref, w2_ref, b2_ref, o_ref, *, out_dim):
    # linear1: x @ W1 + b1 -> ReLU   (f32 MXU accumulation)
    h = jnp.dot(x_ref[...], w1_ref[...], preferred_element_type=jnp.float32)
    h = jnp.maximum(h + b1_ref[...], 0.0)            # b1 is (1, hidden) -> broadcasts

    # linear2: h @ W2p + b2p  (W2/b2 are lane-padded to 128 output columns)
    logits = jnp.dot(h, w2_ref[...], preferred_element_type=jnp.float32)
    logits = logits + b2_ref[...]                    # b2 is (1, out_pad) -> broadcasts

    # Mask the padded lanes to -inf so they contribute no probability mass.
    col = jax.lax.broadcasted_iota(jnp.int32, logits.shape, dimension=1)
    logits = jnp.where(col < out_dim, logits, -jnp.inf)

    # Numerically stable softmax along the last (lane) dim.
    m = jnp.max(logits, axis=-1, keepdims=True)
    e = jnp.exp(logits - m)
    denom = jnp.sum(e, axis=-1, keepdims=True)
    # Exact reciprocal keeps the 1e-5 allclose vs. the f32 reference.
    o_ref[...] = (e * pl.reciprocal(denom, approx=False)).astype(o_ref.dtype)


def offense_policy_forward(x, w1, b1, w2, b2, *, batch_tile=128):
    """x: [B, in_dim]; w1: [in_dim, hidden]; b1: [1, hidden];
    w2: [hidden, out_dim]; b2: [1, out_dim] -> [B, out_dim] softmax probs."""
    B, in_dim = x.shape
    hidden = w1.shape[1]
    out_dim = w2.shape[1]

    # Pad the output feature dim up to a lane-dense width (multiple of 128).
    LANES = 128
    out_pad = max(LANES, ((out_dim + LANES - 1) // LANES) * LANES)
    w2p = jnp.zeros((hidden, out_pad), w2.dtype).at[:, :out_dim].set(w2)
    b2p = jnp.zeros((1, out_pad), b2.dtype).at[:, :out_dim].set(b2)

    # Pad the batch up to a multiple of the batch tile (padded rows sliced off below).
    Bp = ((B + batch_tile - 1) // batch_tile) * batch_tile
    if Bp != B:
        x = jnp.zeros((Bp, in_dim), x.dtype).at[:B].set(x)

    kernel = functools.partial(_mlp_softmax_kernel, out_dim=out_dim)

    out = pl.pallas_call(
        kernel,
        out_shape=jax.ShapeDtypeStruct((Bp, out_pad), jnp.float32),
        grid_spec=pl.GridSpec(
            grid=(Bp // batch_tile,),
            in_specs=[
                # Activations stream with the grid; weights/biases stay resident.
                pl.BlockSpec((batch_tile, in_dim), lambda i: (i, 0)),
                pl.BlockSpec((in_dim, hidden), lambda i: (0, 0)),
                pl.BlockSpec((1, hidden), lambda i: (0, 0)),
                pl.BlockSpec((hidden, out_pad), lambda i: (0, 0)),
                pl.BlockSpec((1, out_pad), lambda i: (0, 0)),
            ],
            out_specs=pl.BlockSpec((batch_tile, out_pad), lambda i: (i, 0)),
        ),
        compiler_params=pltpu.CompilerParams(
            # Batch steps are independent -> megacore-shardable on v7x, harmless elsewhere.
            dimension_semantics=("parallel",)),
    )(x, w1, b1, w2p, b2p)

    # Strip batch padding and the padded (zero-probability) output lanes.
    return out[:B, :out_dim]


def reference_forward(x, w1, b1, w2, b2):
    h = jnp.maximum(x @ w1 + b1, 0.0)
    logits = h @ w2 + b2
    return jax.nn.softmax(logits, axis=-1)


if __name__ == "__main__":
    key = jax.random.PRNGKey(0)
    # OffensePolicyNetwork(in_dim, hidden_dim, out_dim); batch sized to exercise tiling.
    in_dim, hidden_dim, out_dim = 16, 32, 8
    batch = 256  # 2 grid steps of 128 rows each

    kx, k1, kb1, k2, kb2 = jax.random.split(key, 5)
    x = jax.random.normal(kx, (batch, in_dim), dtype=jnp.float32)
    # Deterministic parameter init (uniform like torch's default, but seeded here).
    w1 = jax.random.uniform(k1, (in_dim, hidden_dim), jnp.float32, -0.25, 0.25)
    b1 = jax.random.uniform(kb1, (1, hidden_dim), jnp.float32, -0.25, 0.25)
    w2 = jax.random.uniform(k2, (hidden_dim, out_dim), jnp.float32, -0.18, 0.18)
    b2 = jax.random.uniform(kb2, (1, out_dim), jnp.float32, -0.18, 0.18)

    out = offense_policy_forward(x, w1, b1, w2, b2)
    out = jax.block_until_ready(out)

    ref = reference_forward(x, w1, b1, w2, b2)
    assert out.shape == (batch, out_dim)
    assert jnp.allclose(out, ref, atol=1e-5, rtol=1e-5), "mismatch vs reference"
    assert jnp.allclose(jnp.sum(out, axis=-1), 1.0, atol=1e-5), "probs must sum to 1"

    print("KERNEL_OK")
</pallas_src>

<mosaic_0001>
module attributes {stable_mosaic.version = 11 : i64} {
  func.func @_mlp_softmax_kernel(%arg0: i32, %arg1: memref<128x16xf32, #tpu.memory_space<vmem>>, %arg2: memref<16x32xf32, #tpu.memory_space<vmem>>, %arg3: memref<1x32xf32, #tpu.memory_space<vmem>>, %arg4: memref<32x128xf32, #tpu.memory_space<vmem>>, %arg5: memref<1x128xf32, #tpu.memory_space<vmem>>, %arg6: memref<128x128xf32, #tpu.memory_space<vmem>>) attributes {dimension_semantics = [#tpu.dimension_semantics<parallel>], iteration_bounds = array<i64: 2>, scalar_prefetch = 0 : i64, scratch_operands = 0 : i64, tpu.core_type = #tpu.core_type<tc>, window_params = [{transform_indices = @transform_0, window_bounds = array<i64: 128, 16>}, {pipeline_mode = #tpu.pipeline_mode<synchronous>, transform_indices = @transform_1, window_bounds = array<i64: 16, 32>}, {pipeline_mode = #tpu.pipeline_mode<synchronous>, transform_indices = @transform_2, window_bounds = array<i64: 1, 32>}, {pipeline_mode = #tpu.pipeline_mode<synchronous>, transform_indices = @transform_3, window_bounds = array<i64: 32, 128>}, {pipeline_mode = #tpu.pipeline_mode<synchronous>, transform_indices = @transform_4, window_bounds = array<i64: 1, 128>}, {transform_indices = @transform_5, window_bounds = array<i64: 128, 128>}]} {
    %c0 = arith.constant 0 : index
    %c0_0 = arith.constant 0 : index
    %0 = vector.load %arg1[%c0, %c0_0] : memref<128x16xf32, #tpu.memory_space<vmem>>, vector<128x16xf32>
    %c0_1 = arith.constant 0 : index
    %c0_2 = arith.constant 0 : index
    %1 = vector.load %arg2[%c0_1, %c0_2] : memref<16x32xf32, #tpu.memory_space<vmem>>, vector<16x32xf32>
    %cst = arith.constant dense<0.000000e+00> : vector<128x32xf32>
    %2 = tpu.matmul %0, %1, %cst {dimension_numbers = #tpu.dot_dimension_numbers<[1], [0], [0], [1], [0, 0, 1, 1], [], []>} : vector<128x16xf32>, vector<16x32xf32>, vector<128x32xf32> -> vector<128x32xf32>
    %c0_3 = arith.constant 0 : index
    %c0_4 = arith.constant 0 : index
    %3 = vector.load %arg3[%c0_3, %c0_4] : memref<1x32xf32, #tpu.memory_space<vmem>>, vector<1x32xf32>
    %4 = vector.broadcast %3 : vector<1x32xf32> to vector<128x32xf32>
    %5 = arith.addf %2, %4 : vector<128x32xf32>
    %cst_5 = arith.constant 0.000000e+00 : f32
    %6 = vector.broadcast %cst_5 : f32 to vector<128x32xf32>
    %7 = arith.maximumf %5, %6 : vector<128x32xf32>
    %c0_6 = arith.constant 0 : index
    %c0_7 = arith.constant 0 : index
    %8 = vector.load %arg4[%c0_6, %c0_7] : memref<32x128xf32, #tpu.memory_space<vmem>>, vector<32x128xf32>
    %cst_8 = arith.constant dense<0.000000e+00> : vector<128x128xf32>
    %9 = tpu.matmul %7, %8, %cst_8 {dimension_numbers = #tpu.dot_dimension_numbers<[1], [0], [0], [1], [0, 0, 1, 1], [], []>} : vector<128x32xf32>, vector<32x128xf32>, vector<128x128xf32> -> vector<128x128xf32>
    %c0_9 = arith.constant 0 : index
    %c0_10 = arith.constant 0 : index
    %10 = vector.load %arg5[%c0_9, %c0_10] : memref<1x128xf32, #tpu.memory_space<vmem>>, vector<1x128xf32>
    %11 = vector.broadcast %10 : vector<1x128xf32> to vector<128x128xf32>
    %12 = arith.addf %9, %11 : vector<128x128xf32>
    %13 = tpu.iota {dimensions = array<i32: 1>} : vector<128x128xi32>
    %c8_i32 = arith.constant 8 : i32
    %14 = vector.broadcast %c8_i32 : i32 to vector<128x128xi32>
    %15 = arith.cmpi slt, %13, %14 : vector<128x128xi32>
    %cst_11 = arith.constant 0xFF800000 : f32
    %16 = vector.broadcast %cst_11 : f32 to vector<128x128xf32>
    %17 = arith.select %15, %12, %16 : vector<128x128xi1>, vector<128x128xf32>
    %cst_12 = arith.constant dense<0xFF800000> : vector<128xf32>
    %18 = vector.multi_reduction <maximumf>, %17, %cst_12 [1] : vector<128x128xf32> to vector<128xf32>
    %19 = vector.shape_cast %18 : vector<128xf32> to vector<128x1xf32>
    %20 = vector.broadcast %19 : vector<128x1xf32> to vector<128x128xf32>
    %21 = arith.subf %17, %20 : vector<128x128xf32>
    %22 = math.exp %21 : vector<128x128xf32>
    %cst_13 = arith.constant dense<0.000000e+00> : vector<128xf32>
    %23 = vector.multi_reduction <add>, %22, %cst_13 [1] : vector<128x128xf32> to vector<128xf32>
    %24 = vector.shape_cast %23 : vector<128xf32> to vector<128x1xf32>
    %25 = tpu.reciprocal %24 : vector<128x1xf32> -> vector<128x1xf32>
    %26 = vector.broadcast %25 : vector<128x1xf32> to vector<128x128xf32>
    %27 = arith.mulf %22, %26 : vector<128x128xf32>
    %c0_14 = arith.constant 0 : index
    %c0_15 = arith.constant 0 : index
    %28 = vector.load %arg6[%c0_14, %c0_15] : memref<128x128xf32, #tpu.memory_space<vmem>>, vector<128x128xf32>
    tpu.vector_store %arg6[%c0_14, %c0_15], %27 {strides = array<i32>} : memref<128x128xf32, #tpu.memory_space<vmem>>, vector<128x128xf32>,
    return
  }
  func.func @transform_0(%arg0: i32) -> (i32, i32) {
    %c0_i32 = arith.constant 0 : i32
    %c0_i32_0 = arith.constant 0 : i32
    return %arg0, %c0_i32 : i32, i32
  }
  func.func @transform_1(%arg0: i32) -> (i32, i32) {
    %c0_i32 = arith.constant 0 : i32
    %c0_i32_0 = arith.constant 0 : i32
    %c0_i32_1 = arith.constant 0 : i32
    return %c0_i32, %c0_i32_0 : i32, i32
  }
  func.func @transform_2(%arg0: i32) -> (i32, i32) {
    %c0_i32 = arith.constant 0 : i32
    %c0_i32_0 = arith.constant 0 : i32
    %c0_i32_1 = arith.constant 0 : i32
    return %c0_i32, %c0_i32_0 : i32, i32
  }
  func.func @transform_3(%arg0: i32) -> (i32, i32) {
    %c0_i32 = arith.constant 0 : i32
    %c0_i32_0 = arith.constant 0 : i32
    %c0_i32_1 = arith.constant 0 : i32
    return %c0_i32, %c0_i32_0 : i32, i32
  }
  func.func @transform_4(%arg0: i32) -> (i32, i32) {
    %c0_i32 = arith.constant 0 : i32
    %c0_i32_0 = arith.constant 0 : i32
    %c0_i32_1 = arith.constant 0 : i32
    return %c0_i32, %c0_i32_0 : i32, i32
  }
  func.func @transform_5(%arg0: i32) -> (i32, i32) {
    %c0_i32 = arith.constant 0 : i32
    %c0_i32_0 = arith.constant 0 : i32
    return %arg0, %c0_i32 : i32, i32
  }
}

</mosaic_0001>

<bundles_post_ra>
// kernel: tpu_custom_call.1
= control target key start
LH: loop header
LB: loop body
LE: loop exit
PB: predicated region body
PF: predicated region fallthrough
CT: control target
= control target key end

     0   :  { %10 = vsyncpa [#allocation3], 0  ;;  %s1603_s0 = inlined_call_operand.vmem [shape: f32[256,16], index: 0, kind: input, shape index: {}]   ;;  %s1604_s1 = inlined_call_operand.vmem [shape: f32[16,32], index: 1, kind: input, shape index: {}]   ;;  %s1605_s2 = inlined_call_operand.vmem [shape: f32[1,32], index: 2, kind: input, shape index: {}]   ;;  %s1606_s3 = inlined_call_operand.vmem [shape: f32[32,128], index: 3, kind: input, shape index: {}]   ;;  %s1607_s4 = inlined_call_operand.vmem [shape: f32[1,128], index: 4, kind: input, shape index: {}]   ;;  %s1608_s5 = inlined_call_operand.hbm [shape: f32[256,128], index: 5, kind: output, shape index: {}]  }
   0x1   :  { %12 = vsyncpa [#allocation3 + $0x1], 0  ;;  %s1266_s18 = smov 0   ;;  %s1268_s19 = smov 0  }
   0x2   :  { %s1270_s20 = smov 0   ;;  %s1272_s21 = smov 0  }
   0x3 LB: > { %s1287_s22 = sadd.s32 4294967295, %s1231_s21   ;;  %s921_s23 = sadd.s32 4294967294, %s1231_s21   ;;  %s1231_s21 = sphi %s1272_s21, %s1614_s21   ;;  %s1227_s20 = sphi %s1270_s20, %s1613_s20   ;;  %s1223_s19 = sphi %s1268_s19, %s1612_s19   ;;  %s1219_s18 = sphi %s1266_s18, %s1611_s18  }
   0x4   : > { %s1291_s24 = sadd.s32 1, %s1231_s21   ;;  %s135_s25 = sadd.s32 1, %s1227_s20 }
   0x5   : > { %s132_s26 = ssub.s32 %s1231_s21, %s1291_s24  ;;  %p145_p0 = scmp.ne.s32.totalorder %s1227_s20, %s1223_s19 }
   0x6   : > { %p133_p1 = scmp.eq.s32.totalorder %s132_s26, 0  ;;  %p146_p2 = scmp.eq.s32.totalorder %s1287_s22, 1 }
   0x7   : > { %p151_p3 = scmp.ne.s32.totalorder %s1223_s19, %s1219_s18  ;;  %p152_p4 = scmp.eq.s32.totalorder %s921_s23, 1 }
   0x8   : > { %s1302_s27 = scalar_select %p133_p1, %s1227_s20, %s135_s25  }
   0x9   : > { %p1304_p5 = por %p146_p2, %p145_p0  ;;  %p1308_p6 = por %p152_p4, %p151_p3 }
   0xa   : > { %p924_p7 = scmp.ge.s32.totalorder %s1231_s21, 1  ;;  %p191_p8 = scmp.lt.s32.totalorder %s1231_s21, 3 }
   0xc   : > { %p192_p9 = pnand %p924_p7, %p191_p8 }
   0xd   : > { %s926_s9 = sshll.u32 (!%p192_p9), %s1287_s22, 4  ;;  %s1233_s25 = smov (!%p192_p9), [#allocation2]  }
   0xe   : > { %195 = sbr.rel (%p192_p9) target bundleno = 777 (0x309), region = 40  ;;  %p220_p10 = scmp.lt.s32.totalorder (!%p192_p9), %s926_s9, 31 }
   0xf   : > { %s1175_s26 = sshll.u32 (!%p192_p9), %s1233_s25, 4  ;;  %s1176_s26 = int_to_ptr.vmem [resolvable:$false] %s1175_s26 }
  0x10   : > { %s1177_s30 = scalar_lea.vmem (!%p192_p9), %s1176_s26, 4096 }
  0x13   : > { %v243_v0 = vld [vmem:[%s1604_s1 + $0x8] sm:$0xff]  ;;  %v242_v1 = vld [vmem:[%s1604_s1] sm:$0xff]  ;;  %s1616_s9 = smov (!%p220_p10, %s926_s9), 31  ;;  %vm251_vm0 = vcmask 130048   ;;  %v464_v18 = vld [vmem:[%s1606_s3 + $0x18] sm:$0xff]  ;;  %vm472_vm1 = vcmask 261120  }
  0x14   : > { %1006 = vmatprep.subr.mxu0 %v243_v0  ;;  %s927_s10 = sshll.u32 %s1616_s9, 3  ;;  %1034 = vmatprep.subr.mxu1 %v464_v18  ;;  %v463_v19 = vld [vmem:[%s1606_s3 + $0x10] sm:$0xff]  ;;  %v462_v20 = vld [vmem:[%s1606_s3 + $0x8] sm:$0xff]  ;;  %v461_v21 = vld [vmem:[%s1606_s3] sm:$0xff] }
  0x15   : > { %1007 = vmatpush3.msra.mxu0 %v243_v0  ;;  %s1324_s13 = scalar_lea.vmem %s1603_s0, %s927_s10  ;;  %1035 = vmatpush3.msra.mxu1 %v464_v18  ;;  %v928_v22 = vld [vmem:[%s1605_s2] ss:$0 sm:$0xff]  ;;  %s216_s10 = sand.u32 1, %s1223_s19  }
  0x16   : > { %1008 = vmatprep.subr.mxu0 %v242_v1  ;;  %v226_v2 = vld [vmem:[%s1324_s13] sm:$0xff]  ;;  %v227_v3 = vld [vmem:[%s1324_s13 + $0x8] sm:$0xff]  ;;  %v228_v4 = vld [vmem:[%s1324_s13 + $0x10] sm:$0xff]  ;;  %1036 = vmatprep.subr.mxu1 %v463_v19  ;;  %s925_s11 = sshll.u32 %s216_s10, 7 }
  0x17   : > { %1009 = vmatpush3.msra.mxu0 %v242_v1  ;;  %1010 = vmatprep.mubr.msk.f32.mxu0 %vm251_vm0, %v226_v2  ;;  %v229_v5 = vld [vmem:[%s1324_s13 + $0x18] sm:$0xff]  ;;  %v230_v6 = vld [vmem:[%s1324_s13 + $0x20] sm:$0xff]  ;;  %v231_v7 = vld [vmem:[%s1324_s13 + $0x28] sm:$0xff]  ;;  %s1519_s12 = scalar_lea.vmem [#allocation2], %s925_s11 }
  0x18   : > { %1011 = vmatmul.mubr.msk.f32.vlgmr.msra.gmra.mxu0 %vm251_vm0, %v227_v3  ;;  %v232_v8 = vld [vmem:[%s1324_s13 + $0x30] sm:$0xff]  ;;  %v233_v9 = vld [vmem:[%s1324_s13 + $0x38] sm:$0xff]  ;;  %v234_v10 = vld [vmem:[%s1324_s13 + $0x40] sm:$0xff]  ;;  %1037 = vmatpush3.msra.mxu1 %v463_v19  ;;  %s859_s14 = sshll.u32 %s1519_s12, 4  ;;  %s1556_s14 = int_to_ptr.vmem [resolvable:$true] %s859_s14 }
  0x19   : > { %1013 = vmatprep.mubr.msk.f32.mxu0 %vm251_vm0, %v228_v4  ;;  %v235_v11 = vld [vmem:[%s1324_s13 + $0x48] sm:$0xff]  ;;  %v236_v12 = vld [vmem:[%s1324_s13 + $0x50] sm:$0xff]  ;;  %v237_v13 = vld [vmem:[%s1324_s13 + $0x58] sm:$0xff]  ;;  %1038 = vmatprep.subr.mxu1 %v462_v20  ;;  %s1171_s23 = scalar_lea.vmem %s1556_s14, 2048  ;;  %p1178_p0 = scmp.lt.s32.totalorder %s1556_s14, %s1176_s26 }
  0x1a   : > { %v238_v14 = vld [vmem:[%s1324_s13 + $0x60] sm:$0xff]  ;;  %v239_v15 = vld [vmem:[%s1324_s13 + $0x68] sm:$0xff]  ;;  %v240_v16 = vld [vmem:[%s1324_s13 + $0x70] sm:$0xff]  ;;  %1039 = vmatpush3.msra.mxu1 %v462_v20  ;;  %p1172_p11 = scmp.ne.s32.totalorder %s1556_s14, %s1171_s23  ;;  %p1179_p1 = scmp.lt.s32.totalorder %s1177_s30, %s1171_s23 }
  0x1b   : > { %v241_v17 = vld [vmem:[%s1324_s13 + $0x78] sm:$0xff]  ;;  %1040 = vmatprep.subr.mxu1 %v461_v21  ;;  %s967_s13 = sshll.u32 %s1287_s22, 11  ;;  %s1563_s22 = scalar_lea.sflag [#allocation3], %s216_s10 }
  0x1c   : > { %1014 = vmatmul.mubr.msk.f32.gmra.mxu0 %vm251_vm0, %v229_v5  ;;  %1041 = vmatpush3.msra.mxu1 %v461_v21  ;;  %s1554_s17 = scalar_lea.hbm %s1608_s5, %s967_s13  ;;  %p1173_p12 = pnand %p1172_p11, %p1304_p5 }
  0x1d   : > { %1016 = vmatprep.mubr.msk.f32.mxu0 %vm251_vm0, %v230_v6  ;;  %p1180_p2 = por %p1179_p1, %p1178_p0 }
  0x1e   : > { %p1174_p13 = pneg %p1173_p12 }
  0x20   : > { %1017 = vmatmul.mubr.msk.f32.gmra.mxu0 %vm251_vm0, %v231_v7  ;;  %v666_v7 = vlaneseq  ;;  %p1181_p3 = pnand %p1180_p2, %p1174_p13 }
  0x21   : > { %1019 = vmatprep.mubr.msk.f32.mxu0 %vm251_vm0, %v232_v8 }
  0x22   : > { %v1389_v8 = vand.u32 127, %v666_v7 }
  0x24   : > { %1020 = vmatmul.mubr.msk.f32.gmra.mxu0 %vm251_vm0, %v233_v9  ;;  %v945_v9 = vld [vmem:[%s1607_s4] ss:$0 sm:$0xff]  ;;  %vm668_vm2 = vcmp.lt.s32.totalorder %v1389_v8, 8 }
  0x25   : > { %1022 = vmatprep.mubr.msk.f32.mxu0 %vm251_vm0, %v234_v10 }
  0x28   : > { %1023 = vmatmul.mubr.msk.f32.gmra.mxu0 %vm251_vm0, %v235_v11 }
  0x29   : > { %1025 = vmatprep.mubr.msk.f32.mxu0 %vm251_vm0, %v236_v12 }
  0x2c   : > { %1026 = vmatmul.mubr.msk.f32.gmra.mxu0 %vm251_vm0, %v237_v13 }
  0x2d   : > { %1028 = vmatprep.mubr.msk.f32.mxu0 %vm251_vm0, %v238_v14 }
  0x30   : > { %1029 = vmatmul.mubr.msk.f32.gmra.mxu0 %vm251_vm0, %v239_v15 }
  0x31   : > { %1031 = vmatprep.mubr.msk.f32.mxu0 %vm251_vm0, %v240_v16 }
  0x34   : > { %1032 = vmatmul.mubr.msk.f32.gmra.mxu0 %vm251_vm0, %v241_v17 }
  0xd8   : > { %v1012_v23 = vpop.f32.mrf.mxu0 }
  0xd9   : > { %v372_v24 = vadd.f32 %v1012_v23, %v928_v22 }
  0xda   : > { %v366_v25 = vpop.f32.mrf.mxu0 }
  0xdb   : > { %v367_v26 = vadd.f32 %v928_v22, %v366_v25  ;;  %v446_v29 = vmax.f32 %v372_v24, 0.0 }
  0xdc   : > { %v1015_v27 = vpop.f32.mrf.mxu0 }
  0xdd   : > { %v445_v28 = vmax.f32 %v367_v26, 0.0  ;;  %v382_v30 = vadd.f32 %v1015_v27, %v928_v22 }
  0xde   : > { %v376_v31 = vpop.f32.mrf.mxu0 }
  0xdf   : > { %v377_v32 = vadd.f32 %v928_v22, %v376_v31  ;;  %1042 = vmatprep.mubr.msk.f32.mxu1 %vm472_vm1, %v445_v28  ;;  %v448_v36 = vmax.f32 %v382_v30, 0.0 }
  0xe0   : > { %v1018_v33 = vpop.f32.mrf.mxu0  ;;  %1043 = vmatmul.mubr.msk.f32.vlgmr.msra.gmra.mxu1 %vm472_vm1, %v446_v29 }
  0xe1   : > { %v447_v34 = vmax.f32 %v377_v32, 0.0  ;;  %v392_v35 = vadd.f32 %v1018_v33, %v928_v22 }
  0xe2   : > { %v386_v37 = vpop.f32.mrf.mxu0 }
  0xe3   : > { %v387_v38 = vadd.f32 %v928_v22, %v386_v37  ;;  %1045 = vmatprep.mubr.msk.f32.mxu1 %vm472_vm1, %v447_v34  ;;  %v450_v39 = vmax.f32 %v392_v35, 0.0 }
  0xe4   : > { %v1021_v40 = vpop.f32.mrf.mxu0  ;;  %1046 = vmatmul.mubr.msk.f32.gmra.mxu1 %vm472_vm1, %v448_v36 }
  0xe5   : > { %v449_v41 = vmax.f32 %v387_v38, 0.0  ;;  %v402_v42 = vadd.f32 %v1021_v40, %v928_v22 }
  0xe6   : > { %v396_v43 = vpop.f32.mrf.mxu0 }
  0xe7   : > { %v397_v44 = vadd.f32 %v928_v22, %v396_v43  ;;  %1048 = vmatprep.mubr.msk.f32.mxu1 %vm472_vm1, %v449_v41  ;;  %v452_v45 = vmax.f32 %v402_v42, 0.0 }
  0xe8   : > { %v1024_v46 = vpop.f32.mrf.mxu0  ;;  %1049 = vmatmul.mubr.msk.f32.gmra.mxu1 %vm472_vm1, %v450_v39 }
  0xe9   : > { %v451_v47 = vmax.f32 %v397_v44, 0.0  ;;  %v412_v48 = vadd.f32 %v1024_v46, %v928_v22 }
  0xea   : > { %v406_v49 = vpop.f32.mrf.mxu0 }
  0xeb   : > { %v407_v50 = vadd.f32 %v928_v22, %v406_v49  ;;  %1051 = vmatprep.mubr.msk.f32.mxu1 %vm472_vm1, %v451_v47  ;;  %v454_v51 = vmax.f32 %v412_v48, 0.0 }
  0xec   : > { %v1027_v52 = vpop.f32.mrf.mxu0  ;;  %1052 = vmatmul.mubr.msk.f32.gmra.mxu1 %vm472_vm1, %v452_v45 }
  0xed   : > { %v453_v53 = vmax.f32 %v407_v50, 0.0  ;;  %v422_v54 = vadd.f32 %v1027_v52, %v928_v22 }
  0xee   : > { %v416_v55 = vpop.f32.mrf.mxu0 }
  0xef   : > { %v417_v56 = vadd.f32 %v928_v22, %v416_v55  ;;  %1054 = vmatprep.mubr.msk.f32.mxu1 %vm472_vm1, %v453_v53  ;;  %v456_v57 = vmax.f32 %v422_v54, 0.0 }
  0xf0   : > { %v1030_v58 = vpop.f32.mrf.mxu0  ;;  %1055 = vmatmul.mubr.msk.f32.gmra.mxu1 %vm472_vm1, %v454_v51 }
  0xf1   : > { %v455_v59 = vmax.f32 %v417_v56, 0.0  ;;  %v432_v60 = vadd.f32 %v1030_v58, %v928_v22 }
  0xf2   : > { %v426_v61 = vpop.f32.mrf.mxu0 }
  0xf3   : > { %v427_v62 = vadd.f32 %v928_v22, %v426_v61  ;;  %1057 = vmatprep.mubr.msk.f32.mxu1 %vm472_vm1, %v455_v59  ;;  %v458_v63 = vmax.f32 %v432_v60, 0.0 }
  0xf4   : > { %v1033_v0 = vpop.f32.mrf.mxu0  ;;  %1058 = vmatmul.mubr.msk.f32.gmra.mxu1 %vm472_vm1, %v456_v57 }
  0xf5   : > { %v457_v1 = vmax.f32 %v427_v62, 0.0  ;;  %v442_v2 = vadd.f32 %v1033_v0, %v928_v22 }
  0xf6   : > { %v436_v3 = vpop.f32.mrf.mxu0 }
  0xf7   : > { %v437_v4 = vadd.f32 %v928_v22, %v436_v3  ;;  %1060 = vmatprep.mubr.msk.f32.mxu1 %vm472_vm1, %v457_v1  ;;  %v460_v5 = vmax.f32 %v442_v2, 0.0 }
  0xf8   : > { %1061 = vmatmul.mubr.msk.f32.gmra.mxu1 %vm472_vm1, %v458_v63 }
  0xf9   : > { %v459_v6 = vmax.f32 %v437_v4, 0.0 }
  0xfb   : > { %1063 = vmatprep.mubr.msk.f32.mxu1 %vm472_vm1, %v459_v6 }
  0xfc   : > { %1064 = vmatmul.mubr.msk.f32.gmra.mxu1 %vm472_vm1, %v460_v5 }
 0x1a0   : > { %v1044_v10 = vpop.f32.mrf.mxu1 }
 0x1a1   : > { %v593_v11 = vadd.f32 %v1044_v10, %v945_v9 }
 0x1a2   : > { %v587_v12 = vpop.f32.mrf.mxu1 }
 0x1a3   : > { %v588_v13 = vadd.f32 %v945_v9, %v587_v12  ;;  %v670_v14 = vsel %vm668_vm2, %v593_v11, -inf }
 0x1a4   : > { %687 = vmax.xlane.f32.xlu0 %v670_v14  ;;  %v1047_v15 = vpop.f32.mrf.mxu1 }
 0x1a5   : > { %v603_v16 = vadd.f32 %v1047_v15, %v945_v9  ;;  %v669_v20 = vsel %vm668_vm2, %v588_v13, -inf }
 0x1a6   : > { %v597_v17 = vpop.f32.mrf.mxu1 }
 0x1a7   : > { %v598_v18 = vadd.f32 %v945_v9, %v597_v17  ;;  %v672_v19 = vsel %vm668_vm2, %v603_v16, -inf }
 0x1a8   : > { %691 = vmax.xlane.f32.xlu1 %v672_v19  ;;  %v1050_v21 = vpop.f32.mrf.mxu1  ;;  %685 = vmax.xlane.f32.xlu0 %v669_v20 }
 0x1a9   : > { %v613_v23 = vadd.f32 %v1050_v21, %v945_v9  ;;  %v671_v25 = vsel %vm668_vm2, %v598_v18, -inf }
 0x1aa   : > { %v607_v22 = vpop.f32.mrf.mxu1 }
 0x1ab   : > { %v608_v24 = vadd.f32 %v945_v9, %v607_v22  ;;  %v674_v31 = vsel %vm668_vm2, %v613_v23, -inf }
 0x1ac   : > { %v1053_v26 = vpop.f32.mrf.mxu1  ;;  %689 = vmax.xlane.f32.xlu1 %v671_v25 }
 0x1ad   : > { %v1405_v27 = vsel %vm668_vm2, %v608_v24, -inf  ;;  %v623_v29 = vadd.f32 %v1053_v26, %v945_v9 }
 0x1ae   : > { %v617_v28 = vpop.f32.mrf.mxu1  ;;  %693 = vmax.xlane.f32.xlu0 %v1405_v27 }
 0x1af   : > { %v618_v30 = vadd.f32 %v945_v9, %v617_v28  ;;  %v676_v37 = vsel %vm668_vm2, %v623_v29, -inf }
 0x1b0   : > { %v1056_v32 = vpop.f32.mrf.mxu1  ;;  %695 = vmax.xlane.f32.xlu1 %v674_v31 }
 0x1b1   : > { %v1412_v33 = vsel %vm668_vm2, %v618_v30, -inf  ;;  %v633_v35 = vadd.f32 %v1056_v32, %v945_v9 }
 0x1b2   : > { %v627_v34 = vpop.f32.mrf.mxu1  ;;  %697 = vmax.xlane.f32.xlu0 %v1412_v33 }
 0x1b3   : > { %v628_v36 = vadd.f32 %v945_v9, %v627_v34  ;;  %v1424_v43 = vsel %vm668_vm2, %v633_v35, -inf }
 0x1b4   : > { %v1059_v38 = vpop.f32.mrf.mxu1  ;;  %699 = vmax.xlane.f32.xlu1 %v676_v37 }
 0x1b5   : > { %v1419_v39 = vsel %vm668_vm2, %v628_v36, -inf  ;;  %v643_v41 = vadd.f32 %v1059_v38, %v945_v9 }
 0x1b6   : > { %v637_v40 = vpop.f32.mrf.mxu1  ;;  %701 = vmax.xlane.f32.xlu0 %v1419_v39 }
 0x1b7   : > { %v638_v42 = vadd.f32 %v945_v9, %v637_v40  ;;  %v1434_v49 = vsel %vm668_vm2, %v643_v41, -inf }
 0x1b8   : > { %v1062_v44 = vpop.f32.mrf.mxu1  ;;  %703 = vmax.xlane.f32.xlu1 %v1424_v43 }
 0x1b9   : > { %v1429_v45 = vsel %vm668_vm2, %v638_v42, -inf  ;;  %v653_v47 = vadd.f32 %v1062_v44, %v945_v9 }
 0x1ba   : > { %v647_v46 = vpop.f32.mrf.mxu1  ;;  %705 = vmax.xlane.f32.xlu0 %v1429_v45 }
 0x1bb   : > { %v648_v48 = vadd.f32 %v945_v9, %v647_v46  ;;  %v1444_v55 = vsel %vm668_vm2, %v653_v47, -inf }
 0x1bc   : > { %v1065_v50 = vpop.f32.mrf.mxu1  ;;  %707 = vmax.xlane.f32.xlu1 %v1434_v49 }
 0x1bd   : > { %v1439_v51 = vsel %vm668_vm2, %v648_v48, -inf  ;;  %v663_v53 = vadd.f32 %v1065_v50, %v945_v9 }
 0x1be   : > { %v657_v52 = vpop.f32.mrf.mxu1  ;;  %709 = vmax.xlane.f32.xlu0 %v1439_v51 }
 0x1bf   : > { %v658_v54 = vadd.f32 %v945_v9, %v657_v52  ;;  %v1454_v57 = vsel %vm668_vm2, %v663_v53, -inf }
 0x1c0   : > { %711 = vmax.xlane.f32.xlu1 %v1444_v55 }
 0x1c1   : > { %v1449_v56 = vsel %vm668_vm2, %v658_v54, -inf }
 0x1c2   : > { %713 = vmax.xlane.f32.xlu0 %v1449_v56 }
 0x1c4   : > { %715 = vmax.xlane.f32.xlu1 %v1454_v57 }
 0x22d   : > { %v688_v58 = vpop.xlane.xlu0 %687 }
 0x22e   : > { %v718_v59 = vsub.f32 %v670_v14, %v688_v58 }
 0x230   : > { %v735_v60 = vmul.f32 1.442695, %v718_v59 }
 0x231   : > { %v692_v61 = vpop.xlane.xlu1 %691  ;;  %v686_v62 = vpop.xlane.xlu0 %685 }
 0x232   : > { %1107 = vpow2.f32 %v735_v60  ;;  %v720_v63 = vsub.f32 %v672_v19, %v692_v61  ;;  %v717_v0 = vsub.f32 %v669_v20, %v686_v62 }
 0x234   : > { %v739_v1 = vmul.f32 1.442695, %v720_v63  ;;  %v733_v2 = vmul.f32 1.442695, %v717_v0 }
 0x235   : > { %v690_v3 = vpop.xlane.xlu1 %689 }
 0x236   : > { %1109 = vpow2.f32 %v739_v1  ;;  %v719_v4 = vsub.f32 %v671_v25, %v690_v3 }
 0x237   : > { %1111 = vpow2.f32 %v733_v2  ;;  %v694_v5 = vpop.xlane.xlu0 %693 }
 0x238   : > { %v737_v6 = vmul.f32 1.442695, %v719_v4  ;;  %v721_v7 = vsub.f32 %v1405_v27, %v694_v5 }
 0x239   : > { %v696_v8 = vpop.xlane.xlu1 %695 }
 0x23a   : > { %1113 = vpow2.f32 %v737_v6  ;;  %v722_v9 = vsub.f32 %v674_v31, %v696_v8  ;;  %v741_v10 = vmul.f32 1.442695, %v721_v7 }
 0x23b   : > { %v698_v11 = vpop.xlane.xlu0 %697 }
 0x23c   : > { %v743_v12 = vmul.f32 1.442695, %v722_v9  ;;  %v723_v13 = vsub.f32 %v1412_v33, %v698_v11 }
 0x23d   : > { %v700_v14 = vpop.xlane.xlu1 %699 }
 0x23e   : > { %1115 = vpow2.f32 %v743_v12  ;;  %v724_v15 = vsub.f32 %v676_v37, %v700_v14  ;;  %v745_v17 = vmul.f32 1.442695, %v723_v13 }
 0x23f   : > { %v1459_v16 = vpop.eup %1107  ;;  %1117 = vpow2.f32 %v741_v10  ;;  %v702_v18 = vpop.xlane.xlu0 %701 }
 0x240   : > { %v747_v19 = vmul.f32 1.442695, %v724_v15  ;;  %v725_v20 = vsub.f32 %v1419_v39, %v702_v18  ;;  %767 = vadd.xlane.f32.xlu1 %v1459_v16 }
 0x241   : > { %v704_v21 = vpop.xlane.xlu1 %703 }
 0x242   : > { %1119 = vpow2.f32 %v747_v19  ;;  %v726_v22 = vsub.f32 %v1424_v43, %v704_v21  ;;  %v749_v24 = vmul.f32 1.442695, %v725_v20 }
 0x243   : > { %v1464_v23 = vpop.eup %1109  ;;  %1121 = vpow2.f32 %v745_v17  ;;  %v706_v25 = vpop.xlane.xlu0 %705 }
 0x244   : > { %v1466_v26 = vpop.eup %1111  ;;  %v751_v27 = vmul.f32 1.442695, %v726_v22  ;;  %v727_v28 = vsub.f32 %v1429_v45, %v706_v25  ;;  %771 = vadd.xlane.f32.xlu1 %v1464_v23 }
 0x245   : > { %765 = vadd.xlane.f32.xlu0 %v1466_v26  ;;  %v708_v29 = vpop.xlane.xlu1 %707 }
 0x246   : > { %1123 = vpow2.f32 %v751_v27  ;;  %v728_v30 = vsub.f32 %v1434_v49, %v708_v29  ;;  %v753_v32 = vmul.f32 1.442695, %v727_v28 }
 0x247   : > { %v1472_v31 = vpop.eup %1113  ;;  %1125 = vpow2.f32 %v749_v24  ;;  %v710_v33 = vpop.xlane.xlu0 %709 }
 0x248   : > { %v755_v34 = vmul.f32 1.442695, %v728_v30  ;;  %v729_v35 = vsub.f32 %v1439_v51, %v710_v33 }
 0x249   : > { %769 = vadd.xlane.f32.xlu0 %v1472_v31  ;;  %v712_v36 = vpop.xlane.xlu1 %711 }
 0x24a   : > { %1127 = vpow2.f32 %v755_v34  ;;  %v730_v37 = vsub.f32 %v1444_v55, %v712_v36  ;;  %v757_v39 = vmul.f32 1.442695, %v729_v35 }
 0x24b   : > { %v1477_v38 = vpop.eup %1115  ;;  %1129 = vpow2.f32 %v753_v32  ;;  %v714_v40 = vpop.xlane.xlu0 %713 }
 0x24c   : > { %v1479_v41 = vpop.eup %1117  ;;  %v759_v42 = vmul.f32 1.442695, %v730_v37  ;;  %v731_v43 = vsub.f32 %v1449_v56, %v714_v40  ;;  %775 = vadd.xlane.f32.xlu1 %v1477_v38 }
 0x24d   : > { %773 = vadd.xlane.f32.xlu0 %v1479_v41  ;;  %v716_v44 = vpop.xlane.xlu1 %715 }
 0x24e   : > { %1131 = vpow2.f32 %v759_v42  ;;  %v732_v45 = vsub.f32 %v1454_v57, %v716_v44  ;;  %v761_v47 = vmul.f32 1.442695, %v731_v43 }
 0x24f   : > { %v1485_v46 = vpop.eup %1119  ;;  %1133 = vpow2.f32 %v757_v39 }
 0x250   : > { %v1487_v48 = vpop.eup %1121  ;;  %v763_v49 = vmul.f32 1.442695, %v732_v45  ;;  %779 = vadd.xlane.f32.xlu1 %v1485_v46 }
 0x251   : > { %777 = vadd.xlane.f32.xlu0 %v1487_v48 }
 0x252   : > { %1135 = vpow2.f32 %v763_v49 }
 0x253   : > { %v1491_v50 = vpop.eup %1123  ;;  %1137 = vpow2.f32 %v761_v47 }
 0x254   : > { %v1493_v51 = vpop.eup %1125  ;;  %783 = vadd.xlane.f32.xlu1 %v1491_v50 }
 0x255   : > { %781 = vadd.xlane.f32.xlu0 %v1493_v51 }
 0x257   : > { %v1497_v52 = vpop.eup %1127 }
 0x258   : > { %v1499_v53 = vpop.eup %1129  ;;  %787 = vadd.xlane.f32.xlu1 %v1497_v52 }
 0x259   : > { %785 = vadd.xlane.f32.xlu0 %v1499_v53 }
 0x25b   : > { %v1503_v54 = vpop.eup %1131 }
 0x25c   : > { %v1505_v55 = vpop.eup %1133  ;;  %791 = vadd.xlane.f32.xlu1 %v1503_v54 }
 0x25d   : > { %789 = vadd.xlane.f32.xlu0 %v1505_v55 }
 0x25f   : > { %v1509_v56 = vpop.eup %1135 }
 0x260   : > { %v1511_v57 = vpop.eup %1137  ;;  %795 = vadd.xlane.f32.xlu1 %v1509_v56 }
 0x261   : > { %793 = vadd.xlane.f32.xlu0 %v1511_v57 }
 0x2c9   : > { %v768_v58 = vpop.xlane.xlu1 %767 }
 0x2ca   : > { %1139 = vrcp.f32 %v768_v58 }
 0x2cd   : > { %v772_v59 = vpop.xlane.xlu1 %771 }
 0x2ce   : > { %1141 = vrcp.f32 %v772_v59  ;;  %v766_v60 = vpop.xlane.xlu0 %765 }
 0x2cf   : > { %1143 = vrcp.f32 %v766_v60 }
 0x2d2   : > { %v770_v61 = vpop.xlane.xlu0 %769 }
 0x2d3   : > { %1145 = vrcp.f32 %v770_v61 }
 0x2d5   : > { %v776_v62 = vpop.xlane.xlu1 %775 }
 0x2d6   : > { %1147 = vrcp.f32 %v776_v62  ;;  %v774_v63 = vpop.xlane.xlu0 %773 }
 0x2d7   : > { %v1140_v0 = vpop.eup %1139  ;;  %1149 = vrcp.f32 %v774_v63 }
 0x2d8   : > { %v814_v1 = vmul.f32 %v1140_v0, %v1459_v16 }
 0x2d9   : > { %v780_v2 = vpop.xlane.xlu1 %779 }
 0x2da   : > { %830 = vst [vmem:[%s1519_s12 + $0x8] sm:$0xff] %v814_v1  ;;  %1151 = vrcp.f32 %v780_v2  ;;  %v778_v3 = vpop.xlane.xlu0 %777 }
 0x2db   : > { %v1142_v4 = vpop.eup %1141  ;;  %1153 = vrcp.f32 %v778_v3 }
 0x2dc   : > { %v1144_v5 = vpop.eup %1143  ;;  %v816_v6 = vmul.f32 %v1142_v4, %v1464_v23 }
 0x2dd   : > { %v813_v7 = vmul.f32 %v1144_v5, %v1466_v26  ;;  %v784_v8 = vpop.xlane.xlu1 %783 }
 0x2de   : > { %832 = vst [vmem:[%s1519_s12 + $0x18] sm:$0xff] %v816_v6  ;;  %1155 = vrcp.f32 %v784_v8  ;;  %v782_v9 = vpop.xlane.xlu0 %781 }
 0x2df   : > { %829 = vst [vmem:[%s1519_s12] sm:$0xff] %v813_v7  ;;  %1157 = vrcp.f32 %v782_v9 }
 0x2e0   : > { %v1146_v10 = vpop.eup %1145 }
 0x2e1   : > { %v815_v11 = vmul.f32 %v1146_v10, %v1472_v31  ;;  %v788_v12 = vpop.xlane.xlu1 %787 }
 0x2e2   : > { %1159 = vrcp.f32 %v788_v12  ;;  %v786_v13 = vpop.xlane.xlu0 %785 }
 0x2e3   : > { %v1148_v14 = vpop.eup %1147  ;;  %831 = vst [vmem:[%s1519_s12 + $0x10] sm:$0xff] %v815_v11  ;;  %1161 = vrcp.f32 %v786_v13 }
 0x2e4   : > { %v1150_v15 = vpop.eup %1149  ;;  %v818_v16 = vmul.f32 %v1148_v14, %v1477_v38 }
 0x2e5   : > { %v817_v17 = vmul.f32 %v1150_v15, %v1479_v41  ;;  %v792_v18 = vpop.xlane.xlu1 %791 }
 0x2e6   : > { %834 = vst [vmem:[%s1519_s12 + $0x28] sm:$0xff] %v818_v16  ;;  %1163 = vrcp.f32 %v792_v18  ;;  %v790_v19 = vpop.xlane.xlu0 %789 }
 0x2e7   : > { %v1152_v20 = vpop.eup %1151  ;;  %833 = vst [vmem:[%s1519_s12 + $0x20] sm:$0xff] %v817_v17  ;;  %1165 = vrcp.f32 %v790_v19 }
 0x2e8   : > { %v1154_v21 = vpop.eup %1153  ;;  %v820_v22 = vmul.f32 %v1152_v20, %v1485_v46 }
 0x2e9   : > { %v819_v23 = vmul.f32 %v1154_v21, %v1487_v48  ;;  %v796_v24 = vpop.xlane.xlu1 %795 }
 0x2ea   : > { %836 = vst [vmem:[%s1519_s12 + $0x38] sm:$0xff] %v820_v22  ;;  %1167 = vrcp.f32 %v796_v24  ;;  %v794_v25 = vpop.xlane.xlu0 %793 }
 0x2eb   : > { %v1156_v26 = vpop.eup %1155  ;;  %835 = vst [vmem:[%s1519_s12 + $0x30] sm:$0xff] %v819_v23  ;;  %1169 = vrcp.f32 %v794_v25 }
 0x2ec   : > { %v1158_v27 = vpop.eup %1157  ;;  %v822_v28 = vmul.f32 %v1156_v26, %v1491_v50 }
 0x2ed   : > { %v821_v29 = vmul.f32 %v1158_v27, %v1493_v51 }
 0x2ee   : > { %838 = vst [vmem:[%s1519_s12 + $0x48] sm:$0xff] %v822_v28 }
 0x2ef   : > { %v1160_v30 = vpop.eup %1159  ;;  %837 = vst [vmem:[%s1519_s12 + $0x40] sm:$0xff] %v821_v29 }
 0x2f0   : > { %v1162_v31 = vpop.eup %1161  ;;  %v824_v32 = vmul.f32 %v1160_v30, %v1497_v52 }
 0x2f1   : > { %v823_v33 = vmul.f32 %v1162_v31, %v1499_v53 }
 0x2f2   : > { %840 = vst [vmem:[%s1519_s12 + $0x58] sm:$0xff] %v824_v32 }
 0x2f3   : > { %v1164_v34 = vpop.eup %1163  ;;  %839 = vst [vmem:[%s1519_s12 + $0x50] sm:$0xff] %v823_v33 }
 0x2f4   : > { %v1166_v35 = vpop.eup %1165  ;;  %v826_v36 = vmul.f32 %v1164_v34, %v1503_v54 }
 0x2f5   : > { %v825_v37 = vmul.f32 %v1166_v35, %v1505_v55 }
 0x2f6   : > { %842 = vst [vmem:[%s1519_s12 + $0x68] sm:$0xff] %v826_v36 }
 0x2f7   : > { %v1168_v38 = vpop.eup %1167  ;;  %841 = vst [vmem:[%s1519_s12 + $0x60] sm:$0xff] %v825_v37 }
 0x2f8   : > { %v1170_v39 = vpop.eup %1169  ;;  %v828_v40 = vmul.f32 %v1168_v38, %v1509_v56 }
 0x2f9   : > { %v827_v41 = vmul.f32 %v1170_v39, %v1511_v57 }
 0x2fa   : > { %844 = vst [vmem:[%s1519_s12 + $0x78] sm:$0xff] %v828_v40 }
 0x2fb   : > { %843 = vst [vmem:[%s1519_s12 + $0x70] sm:$0xff] %v827_v41 }
 0x2fc   : > { %1184 = shalt.err (!%p1181_p3)
}
 0x2fd   : > { %s1185_s6 = scalar_lea.hbm %s1554_s17, 2048  ;;  %s1189_s9 = scalar_lea.hbm %s1608_s5, 4096 }
 0x2fe   : > { %p1186_p4 = scmp.ne.s32.totalorder %s1554_s17, %s1185_s6  ;;  %p1190_p9 = scmp.lt.s32.totalorder %s1554_s17, %s1608_s5 }
 0x2ff   : > { %p1191_p10 = scmp.lt.s32.totalorder %s1189_s9, %s1185_s6 }
 0x300   : > { %p1187_p7 = pnand %p1186_p4, %p1304_p5 }
 0x301   : > { %p1192_p11 = por %p1191_p10, %p1190_p9 }
 0x302   : > { %p1188_p8 = pneg %p1187_p7 }
 0x304   : > { %p1193_p12 = pnand %p1192_p11, %p1188_p8 }
 0x306   : > { %1196 = shalt.err (!%p1193_p12)
}
 0x307   : > { %s1234_s12 = smov 128   ;;  %s1235_s13 = smov 8  }
 0x308   : > { %1066 = dma.vmem_to_hbm [thread:$0]  (%p1304_p5), %s1556_s14, 2048, %s1554_s17, %s1563_s22, %s1234_s12, %s1234_s12, %s1235_s13  }
 0x309 PF: > { %p1072_p13 = scmp.ge.s32.totalorder %s1231_s21, 2  ;;  %s874_s15 = sand.u32 1, %s1219_s18  }
 0x30a   : > { %s875_s16 = scalar_lea.sflag [#allocation3], %s874_s15 }
 0x30b   : > { %p1069_p0 = pnand %p1072_p13, %p1308_p6 }
 0x30d   : > { %p1070_p1 = pneg %p1069_p0 }
 0x30f   : > { %1214 = dma.done.wait (%p1070_p1), %s875_s16, 2048  }
 0x310   : > { %1216 = vsyncadd (%p1070_p1), %s875_s16, 4294965248  ;;  %p15_p2 = scmp.ge.s32.totalorder %s1291_s24, 4   ;;  %s1611_s18 = smov %s1223_s19 }
 0x311   : > { %s1612_s19 = smov %s1227_s20  ;;  %s1613_s20 = smov %s1302_s27 }
 0x312   : > { %s1614_s21 = smov %s1291_s24  ;;  %17 = sbr.rel (!%p15_p2) target bundleno = 3 (0x3), region = 75 }
 0x317   :  { %880 = vsyncpa [#allocation3], 1 }
 0x318   :  { %882 = vsyncpa [#allocation3 + $0x1], 1 }

</bundles_post_ra>
